<compile_context>
chip_gen: v7x
topology: tpu7x:2x2x1
jax: 0.10.0
libtpu: 0.0.40
codegen_flags: <defaults>
</compile_context>

<pallas_src>
import numpy as np
import jax
import jax.numpy as jnp
from jax.experimental import pallas as pl
from jax.experimental.pallas import tpu as pltpu

LANE = 128          # vreg lane width
SUBLANE = 8         # vreg sublane count (f32)
MAX_TILE_B = 2048   # batch rows per grid step (multiple of SUBLANE)
VMEM_LIMIT_BYTES = 32 * 1024 * 1024   # explicit scoped-VMEM cap (safe on v5e/v6e/v7x)


def _round_up(x, m):
    return (x + m - 1) // m * m


def qnetwork_kernel(x_ref, w1_ref, b1_ref, w2_ref, b2_ref, w3_ref, b3_ref, o_ref):
    """Fused MLP forward for one batch tile: (Linear -> ReLU) x2 -> Linear.

    Weights arrive as bf16 (MXU-native); accumulation + bias/ReLU epilogue are f32.
    """
    x = x_ref[...].astype(jnp.bfloat16)
    h1 = jnp.dot(x, w1_ref[...], preferred_element_type=jnp.float32) + b1_ref[...]
    h1 = jnp.maximum(h1, 0.0)
    h2 = jnp.dot(h1.astype(jnp.bfloat16), w2_ref[...],
                 preferred_element_type=jnp.float32) + b2_ref[...]
    h2 = jnp.maximum(h2, 0.0)
    o_ref[...] = (jnp.dot(h2.astype(jnp.bfloat16), w3_ref[...],
                          preferred_element_type=jnp.float32)
                  + b3_ref[...]).astype(o_ref.dtype)


def prepare_params(params):
    """Hoisted weight prep: cast weights to bf16 (MXU-native) ONCE.

    Call when the online network's weights change (per optimizer step) and once
    ever for the frozen target network -- not per forward call.  Biases stay
    f32 (added in the f32 epilogue)."""
    w1, b1, w2, b2, w3, b3 = params
    return (w1.astype(jnp.bfloat16), b1,
            w2.astype(jnp.bfloat16), b2,
            w3.astype(jnp.bfloat16), b3)


def qnetwork_forward(state, prepared_params, *, tile_b=None):
    """Batch-tiled fused forward pass. Returns f32 Q-values [batch, action_size]."""
    w1, b1, w2, b2, w3, b3 = prepared_params
    batch, state_size = state.shape
    hidden = w1.shape[1]
    action_size = w3.shape[1]

    # --- Batch tiling: multiples of 8 sublanes, capped at MAX_TILE_B rows per
    #     step.  Once there is enough work, force >= 2 grid steps so the
    #     "parallel" batch axis spans both TensorCores on v7x.
    rows = _round_up(batch, SUBLANE)
    if tile_b is None:
        min_steps = 2 if rows >= 2 * SUBLANE else 1
        n_steps = max(min_steps, pl.cdiv(rows, MAX_TILE_B))
        tile_b = _round_up(pl.cdiv(rows, n_steps), SUBLANE)
    tile_b = max(SUBLANE, _round_up(tile_b, SUBLANE))

    batch_p = _round_up(batch, tile_b)
    if batch_p != batch:
        state = jnp.pad(state, ((0, batch_p - batch), (0, 0)))
    grid = (batch_p // tile_b,)

    # Weights/biases: constant index_map -> VMEM-resident across grid steps.
    const = lambda shape: pl.BlockSpec(shape, lambda i: (0,) * len(shape))

    cost = pl.CostEstimate(
        flops=2 * batch_p * (state_size * hidden + hidden * hidden
                             + hidden * action_size),
        transcendentals=0,
        bytes_accessed=(batch_p * state_size * 4
                        + (w1.size + w2.size + w3.size) * 2
                        + (b1.size + b2.size + b3.size) * 4
                        + batch_p * action_size * 4),
    )

    out = pl.pallas_call(
        qnetwork_kernel,
        out_shape=jax.ShapeDtypeStruct((batch_p, action_size), jnp.float32),
        grid=grid,
        in_specs=[
            pl.BlockSpec((tile_b, state_size), lambda i: (i, 0)),  # streamed batch
            const(w1.shape), const(b1.shape),                      # VMEM-resident
            const(w2.shape), const(b2.shape),
            const(w3.shape), const(b3.shape),
        ],
        # Unpadded output: block last dim == full array last dim (allowed), zero
        # pad bytes in the HBM writeback, exact f32 Q-value semantics.
        out_specs=pl.BlockSpec((tile_b, action_size), lambda i: (i, 0)),
        compiler_params=pltpu.CompilerParams(
            dimension_semantics=("parallel",),       # v7x: shard batch over both TCs
            vmem_limit_bytes=VMEM_LIMIT_BYTES),      # v5e: lift 16 MiB default cap
        cost_estimate=cost,
    )(state, w1, b1, w2, b2, w3, b3)

    return out[:batch]


def init_params(key, state_size, hidden, action_size):
    """Mimics QNetwork.reset_parameters(): weight.data.normal_(*hidden_init(layer)),
    i.e. Normal(mean=-lim, std=lim) with lim = 1/sqrt(weight.size()[0]) where
    PyTorch's weight.size()[0] is out_features (faithfully copied quirk).
    Biases keep PyTorch's default Linear uniform(-1/sqrt(fan_in), 1/sqrt(fan_in))
    init (reset_parameters leaves them untouched)."""
    ks = jax.random.split(key, 6)

    def linear(kw, kb, fin, fout):
        lim = 1.0 / np.sqrt(fout)            # weight.size()[0] == out_features
        w = (-lim) + lim * jax.random.normal(kw, (fin, fout), jnp.float32)
        b_lim = 1.0 / np.sqrt(fin)
        b = jax.random.uniform(kb, (1, fout), jnp.float32, -b_lim, b_lim)
        return w, b

    w1, b1 = linear(ks[0], ks[1], state_size, hidden)
    w2, b2 = linear(ks[2], ks[3], hidden, hidden)
    w3, b3 = linear(ks[4], ks[5], hidden, action_size)
    return (w1, b1, w2, b2, w3, b3)


def reference_forward_f32(state, params):
    """Pure-f32 JAX reference (module semantics)."""
    w1, b1, w2, b2, w3, b3 = params
    h = jnp.maximum(state @ w1 + b1, 0.0)
    h = jnp.maximum(h @ w2 + b2, 0.0)
    return h @ w3 + b3


def reference_forward_bf16(state, params):
    """JAX reference that matches the kernel's mixed precision (bf16 in, f32 acc).
    The bf16 inputs / f32 accumulation are a deliberate DQN-acceptable precision
    choice; argmax ties between nearly-equal Q-values may differ from pure f32."""
    w1, b1, w2, b2, w3, b3 = params
    dot = lambda a, w: jnp.dot(a.astype(jnp.bfloat16), w.astype(jnp.bfloat16),
                               preferred_element_type=jnp.float32)
    h = jnp.maximum(dot(state, w1) + b1, 0.0)
    h = jnp.maximum(dot(h, w2) + b2, 0.0)
    return dot(h, w3) + b3


if __name__ == "__main__":
    # Small shapes consistent with the module: batch=2 states of dim 16,
    # hidden width 32, 8 discrete actions.
    batch, state_size, hidden, action_size = 2, 16, 32, 8

    key = jax.random.PRNGKey(0)
    k_state, k_params = jax.random.split(key)

    state = jax.random.normal(k_state, (batch, state_size), jnp.float32)
    params = init_params(k_params, state_size, hidden, action_size)

    # Hoisted (once-per-weight-update) bf16 cast of the weights.
    prepared = prepare_params(params)

    # TODO(synk): the optional `action` concat at layer idx==3 (critic-style call)
    # is plain-JAX glue (jnp.concatenate((data, action), axis=1)) feeding a kernel
    # whose layer-3 weight has a wider input dim; not exercised here.

    fwd = jax.jit(lambda s, p: qnetwork_forward(s, p))
    q_vals = fwd(state, prepared)
    q_vals = jax.block_until_ready(q_vals)
    assert q_vals.shape == (batch, action_size)

    # Tight check against a bf16-matched reference, plus a looser sanity check
    # against the pure-f32 module semantics.
    ref_bf16 = reference_forward_bf16(state, params)
    np.testing.assert_allclose(np.asarray(q_vals), np.asarray(ref_bf16),
                               rtol=1e-3, atol=1e-3)
    ref_f32 = reference_forward_f32(state, params)
    np.testing.assert_allclose(np.asarray(q_vals), np.asarray(ref_f32),
                               rtol=5e-2, atol=5e-2)

    print("KERNEL_OK")
</pallas_src>

<mosaic_0001>
module attributes {stable_mosaic.version = 11 : i64} {
  func.func @qnetwork_kernel(%arg0: i32, %arg1: memref<8x16xf32, #tpu.memory_space<vmem>>, %arg2: memref<16x32xbf16, #tpu.memory_space<vmem>>, %arg3: memref<1x32xf32, #tpu.memory_space<vmem>>, %arg4: memref<32x32xbf16, #tpu.memory_space<vmem>>, %arg5: memref<1x32xf32, #tpu.memory_space<vmem>>, %arg6: memref<32x8xbf16, #tpu.memory_space<vmem>>, %arg7: memref<1x8xf32, #tpu.memory_space<vmem>>, %arg8: memref<8x8xf32, #tpu.memory_space<vmem>>) attributes {dimension_semantics = [#tpu.dimension_semantics<parallel>], iteration_bounds = array<i64: 1>, scalar_prefetch = 0 : i64, scratch_operands = 0 : i64, tpu.core_type = #tpu.core_type<tc>, window_params = [{transform_indices = @transform_0, window_bounds = array<i64: 8, 16>}, {pipeline_mode = #tpu.pipeline_mode<synchronous>, transform_indices = @transform_1, window_bounds = array<i64: 16, 32>}, {pipeline_mode = #tpu.pipeline_mode<synchronous>, transform_indices = @transform_2, window_bounds = array<i64: 1, 32>}, {pipeline_mode = #tpu.pipeline_mode<synchronous>, transform_indices = @transform_3, window_bounds = array<i64: 32, 32>}, {pipeline_mode = #tpu.pipeline_mode<synchronous>, transform_indices = @transform_4, window_bounds = array<i64: 1, 32>}, {pipeline_mode = #tpu.pipeline_mode<synchronous>, transform_indices = @transform_5, window_bounds = array<i64: 32, 8>}, {pipeline_mode = #tpu.pipeline_mode<synchronous>, transform_indices = @transform_6, window_bounds = array<i64: 1, 8>}, {transform_indices = @transform_7, window_bounds = array<i64: 8, 8>}]} {
    %c0 = arith.constant 0 : index
    %c0_0 = arith.constant 0 : index
    %0 = vector.load %arg1[%c0, %c0_0] : memref<8x16xf32, #tpu.memory_space<vmem>>, vector<8x16xf32>
    %1 = arith.truncf %0 : vector<8x16xf32> to vector<8x16xbf16>
    %c0_1 = arith.constant 0 : index
    %c0_2 = arith.constant 0 : index
    %2 = vector.load %arg2[%c0_1, %c0_2] : memref<16x32xbf16, #tpu.memory_space<vmem>>, vector<16x32xbf16>
    %cst = arith.constant dense<0.000000e+00> : vector<8x32xf32>
    %3 = tpu.matmul %1, %2, %cst {dimension_numbers = #tpu.dot_dimension_numbers<[1], [0], [0], [1], [0, 0, 1, 1], [], []>} : vector<8x16xbf16>, vector<16x32xbf16>, vector<8x32xf32> -> vector<8x32xf32>
    %c0_3 = arith.constant 0 : index
    %c0_4 = arith.constant 0 : index
    %4 = vector.load %arg3[%c0_3, %c0_4] : memref<1x32xf32, #tpu.memory_space<vmem>>, vector<1x32xf32>
    %5 = vector.broadcast %4 : vector<1x32xf32> to vector<8x32xf32>
    %6 = arith.addf %3, %5 : vector<8x32xf32>
    %cst_5 = arith.constant 0.000000e+00 : f32
    %7 = vector.broadcast %cst_5 : f32 to vector<8x32xf32>
    %8 = arith.maximumf %6, %7 : vector<8x32xf32>
    %9 = arith.truncf %8 : vector<8x32xf32> to vector<8x32xbf16>
    %c0_6 = arith.constant 0 : index
    %c0_7 = arith.constant 0 : index
    %10 = vector.load %arg4[%c0_6, %c0_7] : memref<32x32xbf16, #tpu.memory_space<vmem>>, vector<32x32xbf16>
    %cst_8 = arith.constant dense<0.000000e+00> : vector<8x32xf32>
    %11 = tpu.matmul %9, %10, %cst_8 {dimension_numbers = #tpu.dot_dimension_numbers<[1], [0], [0], [1], [0, 0, 1, 1], [], []>} : vector<8x32xbf16>, vector<32x32xbf16>, vector<8x32xf32> -> vector<8x32xf32>
    %c0_9 = arith.constant 0 : index
    %c0_10 = arith.constant 0 : index
    %12 = vector.load %arg5[%c0_9, %c0_10] : memref<1x32xf32, #tpu.memory_space<vmem>>, vector<1x32xf32>
    %13 = vector.broadcast %12 : vector<1x32xf32> to vector<8x32xf32>
    %14 = arith.addf %11, %13 : vector<8x32xf32>
    %cst_11 = arith.constant 0.000000e+00 : f32
    %15 = vector.broadcast %cst_11 : f32 to vector<8x32xf32>
    %16 = arith.maximumf %14, %15 : vector<8x32xf32>
    %17 = arith.truncf %16 : vector<8x32xf32> to vector<8x32xbf16>
    %c0_12 = arith.constant 0 : index
    %c0_13 = arith.constant 0 : index
    %18 = vector.load %arg6[%c0_12, %c0_13] : memref<32x8xbf16, #tpu.memory_space<vmem>>, vector<32x8xbf16>
    %cst_14 = arith.constant dense<0.000000e+00> : vector<8x8xf32>
    %19 = tpu.matmul %17, %18, %cst_14 {dimension_numbers = #tpu.dot_dimension_numbers<[1], [0], [0], [1], [0, 0, 1, 1], [], []>} : vector<8x32xbf16>, vector<32x8xbf16>, vector<8x8xf32> -> vector<8x8xf32>
    %c0_15 = arith.constant 0 : index
    %c0_16 = arith.constant 0 : index
    %20 = vector.load %arg7[%c0_15, %c0_16] : memref<1x8xf32, #tpu.memory_space<vmem>>, vector<1x8xf32>
    %21 = vector.broadcast %20 : vector<1x8xf32> to vector<8x8xf32>
    %22 = arith.addf %19, %21 : vector<8x8xf32>
    %c0_17 = arith.constant 0 : index
    %c0_18 = arith.constant 0 : index
    %23 = vector.load %arg8[%c0_17, %c0_18] : memref<8x8xf32, #tpu.memory_space<vmem>>, vector<8x8xf32>
    tpu.vector_store %arg8[%c0_17, %c0_18], %22 {strides = array<i32>} : memref<8x8xf32, #tpu.memory_space<vmem>>, vector<8x8xf32>,
    return
  }
  func.func @transform_0(%arg0: i32) -> (i32, i32) {
    %c0_i32 = arith.constant 0 : i32
    %c0_i32_0 = arith.constant 0 : i32
    return %arg0, %c0_i32 : i32, i32
  }
  func.func @transform_1(%arg0: i32) -> (i32, i32) {
    %c0_i32 = arith.constant 0 : i32
    %c0_i32_0 = arith.constant 0 : i32
    %c0_i32_1 = arith.constant 0 : i32
    return %c0_i32, %c0_i32_0 : i32, i32
  }
  func.func @transform_2(%arg0: i32) -> (i32, i32) {
    %c0_i32 = arith.constant 0 : i32
    %c0_i32_0 = arith.constant 0 : i32
    %c0_i32_1 = arith.constant 0 : i32
    return %c0_i32, %c0_i32_0 : i32, i32
  }
  func.func @transform_3(%arg0: i32) -> (i32, i32) {
    %c0_i32 = arith.constant 0 : i32
    %c0_i32_0 = arith.constant 0 : i32
    %c0_i32_1 = arith.constant 0 : i32
    return %c0_i32, %c0_i32_0 : i32, i32
  }
  func.func @transform_4(%arg0: i32) -> (i32, i32) {
    %c0_i32 = arith.constant 0 : i32
    %c0_i32_0 = arith.constant 0 : i32
    %c0_i32_1 = arith.constant 0 : i32
    return %c0_i32, %c0_i32_0 : i32, i32
  }
  func.func @transform_5(%arg0: i32) -> (i32, i32) {
    %c0_i32 = arith.constant 0 : i32
    %c0_i32_0 = arith.constant 0 : i32
    %c0_i32_1 = arith.constant 0 : i32
    return %c0_i32, %c0_i32_0 : i32, i32
  }
  func.func @transform_6(%arg0: i32) -> (i32, i32) {
    %c0_i32 = arith.constant 0 : i32
    %c0_i32_0 = arith.constant 0 : i32
    %c0_i32_1 = arith.constant 0 : i32
    return %c0_i32, %c0_i32_0 : i32, i32
  }
  func.func @transform_7(%arg0: i32) -> (i32, i32) {
    %c0_i32 = arith.constant 0 : i32
    %c0_i32_0 = arith.constant 0 : i32
    return %arg0, %c0_i32 : i32, i32
  }
}

</mosaic_0001>

<bundles_post_ra>
// kernel: _lambda_.1
= control target key start
LH: loop header
LB: loop body
LE: loop exit
PB: predicated region body
PF: predicated region fallthrough
CT: control target
= control target key end

     0   :  { %v279_v0 = vmov 0.0   ;;  %vm280_vm0 = vmmov 0   ;;  %vm44_vm1 = vcmask 130048   ;;  %vm113_vm2 = vcmask 261120   ;;  %s351_s1 = inlined_call_operand.vmem [shape: bf16[16,32], index: 1, kind: input, shape index: {}]   ;;  %s352_s0 = inlined_call_operand.vmem [shape: f32[8,16], index: 0, kind: input, shape index: {}]   ;;  %s353_s3 = inlined_call_operand.vmem [shape: bf16[32,32], index: 3, kind: input, shape index: {}]   ;;  %s354_s5 = inlined_call_operand.vmem [shape: bf16[32,8], index: 5, kind: input, shape index: {}]   ;;  %s355_s2 = inlined_call_operand.vmem [shape: f32[1,32], index: 2, kind: input, shape index: {}]   ;;  %s356_s4 = inlined_call_operand.vmem [shape: f32[1,32], index: 4, kind: input, shape index: {}]   ;;  %s357_s6 = inlined_call_operand.vmem [shape: f32[1,8], index: 6, kind: input, shape index: {}]   ;;  %s358_s7 = inlined_call_operand.vmem [shape: f32[8,8], index: 7, kind: output, shape index: {}]  }
   0x1   :  { %250 = vmatprep.subr.bf16.mxu0 %v279_v0  ;;  %v274_v1 = vld [vmem:[%s351_s1] sm:$0xff]   ;;  %252 = vmatprep.mubr.msk.bf16.mxu0 %vm280_vm0, %v279_v0  ;;  %v276_v5 = vld [vmem:[%s353_s3 + $0x8] sm:$0xff]   ;;  %vm225_vm3 = vcmask 64512  }
   0x2   :  { %v27_v2 = vld [vmem:[%s352_s0] sm:$0xff]  ;;  %256 = vmatprep.subr.bf16.mxu1 %v279_v0  ;;  %260 = vmatprep.mubr.msk.bf16.mxu1 %vm280_vm0, %v279_v0  ;;  %v278_v15 = vld [vmem:[%s354_s5 + $0x8] sm:$0xff]  }
   0x3   :  { %251 = vmatpush3.bf16.msra.mxu0 %v274_v1  ;;  %v28_v3 = vpack.c.bf16 %v27_v2, %v27_v2  ;;  %v275_v4 = vld [vmem:[%s353_s3] sm:$0xff]  }
   0x4   :  { %264 = vmatprep.subr.bf16.mxu0 %v279_v0  ;;  %257 = vmatpush3.bf16.msra.mxu1 %v275_v4  ;;  %v277_v6 = vld [vmem:[%s354_s5] sm:$0xff]  }
   0x5   :  { %258 = vmatprep.subr.bf16.mxu1 %v279_v0  ;;  %v231_v7 = vld [vmem:[%s355_s2] ss:$0 sm:$0xff] }
   0x6   :  { %253 = vmatmul.mubr.msk.bf16.vlgmr.msra.gmra.mrb[0].mxu0 %vm44_vm1, %v28_v3  ;;  %v234_v16 = vld [vmem:[%s356_s4] ss:$0 sm:$0xff] }
   0x7   :  { %268 = vmatprep.mubr.msk.bf16.mxu0 %vm280_vm0, %v279_v0  ;;  %265 = vmatpush3.bf16.msra.mxu0 %v277_v6  ;;  %v238_v24 = vld [vmem:[%s357_s6] ss:$0 sm:$0xff] }
   0x8   :  { %259 = vmatpush3.bf16.msra.mxu1 %v276_v5  ;;  %266 = vmatprep.subr.bf16.mxu0 %v279_v0 }
   0xb   :  { %267 = vmatpush3.bf16.msra.mxu0 %v278_v15 }
  0xd9   :  { %v82_v8 = vpop.f32.mrb[0].mxu0 }
  0xda   :  { %v83_v9 = vadd.f32 %v231_v7, %v82_v8  ;;  %v254_v10 = vpop.f32.mrb[1].mxu0 }
  0xdb   :  { %v85_v11 = vpop.f32.mrb[2].mxu0 }
  0xdc   :  { %v88_v12 = vmax.f32 %v83_v9, 0.0  ;;  %v255_v13 = vpop.f32.mrb[3].mxu0 }
  0xde   :  { %v89_v14 = vpack.c.bf16 %v88_v12, %v88_v12 }
  0xe0   :  { %261 = vmatmul.mubr.msk.bf16.vlgmr.msra.gmra.mrb[0].mxu1 %vm113_vm2, %v89_v14 }
 0x1b3   :  { %v151_v17 = vpop.f32.mrb[0].mxu1 }
 0x1b4   :  { %v152_v18 = vadd.f32 %v234_v16, %v151_v17  ;;  %v262_v19 = vpop.f32.mrb[1].mxu1 }
 0x1b5   :  { %v154_v20 = vpop.f32.mrb[2].mxu1 }
 0x1b6   :  { %v157_v21 = vmax.f32 %v152_v18, 0.0  ;;  %v263_v22 = vpop.f32.mrb[3].mxu1 }
 0x1b8   :  { %v158_v23 = vpack.c.bf16 %v157_v21, %v157_v21 }
 0x1ba   :  { %269 = vmatmul.mubr.msk.bf16.vlgmr.msra.gmra.mrb[4].mxu0 %vm113_vm2, %v158_v23 }
 0x28d   :  { %v219_v25 = vpop.f32.mrb[4].mxu0 }
 0x28e   :  { %v220_v26 = vadd.f32 %v238_v24, %v219_v25  ;;  %v270_v27 = vpop.f32.mrb[5].mxu0 }
 0x28f   :  { %v222_v28 = vpop.f32.mrb[6].mxu0 }
 0x290   :  { %226 = vst.msk [vmem:[%s358_s7] sm:$0xff] %vm225_vm3, %v220_v26  ;;  %v271_v29 = vpop.f32.mrb[7].mxu0 }

</bundles_post_ra>
